<compile_context>
chip_gen: v7x
topology: tpu7x:2x2x1
jax: 0.10.0
libtpu: 0.0.40
codegen_flags: <defaults>
</compile_context>

<pallas_src>
import math
import functools

import jax
import jax.numpy as jnp
from jax import lax
from jax.experimental import pallas as pl
from jax.experimental.pallas import tpu as pltpu


_NEG = -1e30          # finite "minus infinity" (keeps fully-masked rows finite)
_MB = 1024 * 1024


# --------------------------------------------------------------------------
# Tiling / VMEM helpers
# --------------------------------------------------------------------------
def _divisor_tiles(dim, multiple, cap):
    """Divisors of `dim` that are multiples of `multiple` and <= cap,
    descending.  The full dimension is always included as a last resort (a
    full-axis block always satisfies the (8, 128) block constraint)."""
    cands = {d for d in range(multiple, min(dim, cap) + 1, multiple)
             if dim % d == 0}
    cands.add(dim)
    return sorted(cands, reverse=True)


def _fused_vmem_bytes(tq, sk, dk, dv, in_bytes, mask_bytes):
    """Rough per-step VMEM footprint of the fused (K/V resident) kernel."""
    blocks = (tq * dk + sk * dk + sk * dv + tq * dv + tq * sk) * in_bytes
    if mask_bytes:
        blocks += tq * sk * mask_bytes
    blocks *= 2                       # double-buffered pipeline copies
    temps = 4 * tq * sk * 4           # live f32 scores / probs / weights
    return blocks + temps


def _flash_vmem_bytes(tq, tk, dk, dv, in_bytes, mask_bytes):
    """Rough per-step VMEM footprint of the flash fallback (pass 1)."""
    blocks = (tq * dk + tk * dk + tk * dv + tq * dv) * in_bytes \
        + tq * tk * 4 + tq * 4
    if mask_bytes:
        blocks += tq * tk * mask_bytes
    blocks *= 2
    scratch = tq * dk * in_bytes + tq * dv * 4 + 2 * tq * 4
    temps = 4 * tq * tk * 4
    return blocks + scratch + temps


def _vmem_limit(footprint):
    # Explicit scoped-VMEM request: footprint + headroom, but never more than
    # 56 MiB so the request is valid even on v7x (64 MiB physical per core).
    return int(min(max(footprint + 16 * _MB, 32 * _MB), 56 * _MB))


# --------------------------------------------------------------------------
# Path A: fused single-pass kernel (K/V resident across the whole key axis).
# grid = (B, Sq // tq); no reduction axis -> both grid axes "parallel".
# --------------------------------------------------------------------------
def _fused_attn_kernel(*refs, scale, has_mask, compute_dtype):
    if has_mask:
        q_ref, k_ref, v_ref, mask_ref, o_ref, attn_ref = refs
    else:
        q_ref, k_ref, v_ref, o_ref, attn_ref = refs
        mask_ref = None

    # Fold 1/sqrt(d_k) into the small (tq, dk) Q tile, not the (tq, Sk) scores.
    q = (q_ref[...] * scale).astype(compute_dtype)             # (tq, dk)
    k = k_ref[...].astype(compute_dtype)                       # (Sk, dk)

    # Contract the last dim of both operands -> no transpose of K emitted.
    s = lax.dot_general(q, k, (((1,), (1,)), ((), ())),
                        preferred_element_type=jnp.float32)    # (tq, Sk)
    if has_mask:
        s = jnp.where(mask_ref[...] != 0, s, _NEG)

    m = jnp.max(s, axis=-1, keepdims=True)                     # (tq, 1)
    p = jnp.exp(s - m)                                         # (tq, Sk)
    l = jnp.sum(p, axis=-1, keepdims=True)                     # (tq, 1)

    # EUP approximate reciprocal + two Newton steps on the (tq, 1) vector.
    inv = pl.reciprocal(l, approx=True)
    inv = inv * (2.0 - l * inv)
    inv = inv * (2.0 - l * inv)

    attn = p * inv                                             # normalized weights
    attn_ref[...] = attn.astype(attn_ref.dtype)
    o_ref[...] = jnp.dot(attn.astype(compute_dtype),
                         v_ref[...].astype(compute_dtype),
                         preferred_element_type=jnp.float32).astype(o_ref.dtype)


# --------------------------------------------------------------------------
# Path B (fallback for very long key axes): flash online softmax.
# Pass 1 writes the output, the masked/scaled scores and the row LSE.
# --------------------------------------------------------------------------
def _flash_fwd_kernel(*refs, scale, has_mask, compute_dtype):
    if has_mask:
        (q_ref, k_ref, v_ref, mask_ref,
         o_ref, s_out_ref, lse_ref, qs_sc, m_sc, l_sc, acc_sc) = refs
    else:
        (q_ref, k_ref, v_ref,
         o_ref, s_out_ref, lse_ref, qs_sc, m_sc, l_sc, acc_sc) = refs
        mask_ref = None

    ki = pl.program_id(2)

    @pl.when(ki == 0)
    def _init():
        # Hoist the Q scaling out of the key loop: once per (b, qi) tile.
        qs_sc[...] = (q_ref[...] * scale).astype(qs_sc.dtype)
        m_sc[...] = jnp.full_like(m_sc, _NEG)
        l_sc[...] = jnp.zeros_like(l_sc)
        acc_sc[...] = jnp.zeros_like(acc_sc)

    s = lax.dot_general(qs_sc[...], k_ref[...].astype(compute_dtype),
                        (((1,), (1,)), ((), ())),
                        preferred_element_type=jnp.float32)    # (tq, tk)
    if has_mask:
        s = jnp.where(mask_ref[...] != 0, s, _NEG)

    # Stream the masked, scaled scores to HBM.  The (cheap) second pass turns
    # them into normalized weights without re-reading Q/K/mask or redoing the
    # QK^T matmul; its extra exp is hidden under its own HBM read/write.
    s_out_ref[...] = s

    m_prev = m_sc[...]
    m_new = jnp.maximum(m_prev, jnp.max(s, axis=-1, keepdims=True))
    alpha = jnp.exp(m_prev - m_new)
    p = jnp.exp(s - m_new)                                     # (tq, tk)
    l_sc[...] = alpha * l_sc[...] + jnp.sum(p, axis=-1, keepdims=True)
    acc_sc[...] = alpha * acc_sc[...] + jnp.dot(
        p.astype(compute_dtype), v_ref[...].astype(compute_dtype),
        preferred_element_type=jnp.float32)
    m_sc[...] = m_new

    @pl.when(ki == pl.num_programs(2) - 1)
    def _finalize():
        l = l_sc[...]
        inv = pl.reciprocal(l, approx=True)
        inv = inv * (2.0 - l * inv)
        inv = inv * (2.0 - l * inv)
        o_ref[...] = (acc_sc[...] * inv).astype(o_ref.dtype)
        # lse kept as a (tq, 1) tile: total traffic is only B*Sq*4 bytes and
        # keeping it 2-D avoids a per-step sublane->lane relayout.
        lse_ref[...] = m_sc[...] + jnp.log(l)


def _weights_from_scores_kernel(s_ref, lse_ref, attn_ref):
    # softmax(s) = exp(s - lse): a pure VPU/EUP rescale of the stored scores.
    attn_ref[...] = jnp.exp(s_ref[...] - lse_ref[...]).astype(attn_ref.dtype)


# --------------------------------------------------------------------------
# Wrapper
# --------------------------------------------------------------------------
def scaled_dot_product_attention(Q, K, V, mask=None, d_model=None,
                                 mxu_dtype=None,
                                 vmem_budget_bytes=40 * _MB):
    """Pallas equivalent of ScaledDotProductAttention.forward.

    Returns (attention_output (B, Sq, dv), attention_weights (B, Sq, Sk)).

    mxu_dtype: optionally cast MXU operands (e.g. jnp.bfloat16, with f32
      accumulation) for v6e/v7x throughput; default None keeps the input
      dtype exactly.
    """
    assert Q.ndim == 3 and K.ndim == 3 and V.ndim == 3, "expected (B, S, D)"
    B, Sq, dk = Q.shape
    _, Sk, _ = K.shape
    dv = V.shape[-1]
    assert K.shape == (B, Sk, dk) and V.shape[:2] == (B, Sk)
    if d_model is None:
        d_model = dk
    scale = 1.0 / math.sqrt(d_model)

    has_mask = mask is not None
    if has_mask:
        assert mask.shape == (B, Sq, Sk), "mask must be (B, Sq, Sk)"
        if mask.dtype == jnp.bool_:
            mask = mask.astype(jnp.int8)      # 1B -> 1B; avoids i1 refs
    mask_bytes = jnp.dtype(mask.dtype).itemsize if has_mask else 0

    in_bytes = jnp.dtype(Q.dtype).itemsize
    compute_dtype = (jnp.dtype(mxu_dtype) if mxu_dtype is not None
                     else jnp.dtype(Q.dtype))

    flops = 2 * B * Sq * Sk * (dk + dv)
    transcendentals = B * Sq * Sk
    io_bytes = (Q.size + K.size + V.size + B * Sq * dv + B * Sq * Sk) * in_bytes
    if has_mask:
        io_bytes += mask.size * mask_bytes

    # ------------------------------------------------------------------
    # Path A: fused single pass.  The budget default is conservative enough
    # for v7x's 64 MiB VMEM; on v5e/v6e it only means we fall back earlier
    # than strictly necessary.
    # ------------------------------------------------------------------
    fused_tq = None
    for cand in _divisor_tiles(Sq, 8, 512):
        if _fused_vmem_bytes(cand, Sk, dk, dv, in_bytes,
                             mask_bytes) <= vmem_budget_bytes:
            fused_tq = cand
            break

    if fused_tq is not None:
        tq = fused_tq
        footprint = _fused_vmem_bytes(tq, Sk, dk, dv, in_bytes, mask_bytes)
        inputs = [Q, K, V]
        in_specs = [
            pl.BlockSpec((None, tq, dk), lambda b, qi: (b, qi, 0)),
            # K/V block index is invariant across qi -> DMA'd once per batch.
            pl.BlockSpec((None, Sk, dk), lambda b, qi: (b, 0, 0)),
            pl.BlockSpec((None, Sk, dv), lambda b, qi: (b, 0, 0)),
        ]
        if has_mask:
            inputs.append(mask)
            in_specs.append(
                pl.BlockSpec((None, tq, Sk), lambda b, qi: (b, qi, 0)))

        kernel = functools.partial(_fused_attn_kernel, scale=scale,
                                   has_mask=has_mask,
                                   compute_dtype=compute_dtype)
        out, attn = pl.pallas_call(
            kernel,
            out_shape=(jax.ShapeDtypeStruct((B, Sq, dv), Q.dtype),
                       jax.ShapeDtypeStruct((B, Sq, Sk), Q.dtype)),
            grid=(B, Sq // tq),
            in_specs=in_specs,
            out_specs=(pl.BlockSpec((None, tq, dv), lambda b, qi: (b, qi, 0)),
                       pl.BlockSpec((None, tq, Sk), lambda b, qi: (b, qi, 0))),
            compiler_params=pltpu.CompilerParams(
                dimension_semantics=("parallel", "parallel"),
                vmem_limit_bytes=_vmem_limit(footprint)),
            cost_estimate=pl.CostEstimate(flops=flops,
                                          transcendentals=transcendentals,
                                          bytes_accessed=io_bytes),
        )(*inputs)
        return out, attn

    # ------------------------------------------------------------------
    # Path B: flash fallback for key axes too long for VMEM residency.
    # ------------------------------------------------------------------
    tq_cands = _divisor_tiles(Sq, 8, 256)
    tk_cands = _divisor_tiles(Sk, 128, 512)
    chosen = None
    for cand_tq in tq_cands:            # prefer large tq (fewer K/V re-reads)
        for cand_tk in tk_cands:
            if _flash_vmem_bytes(cand_tq, cand_tk, dk, dv, in_bytes,
                                 mask_bytes) <= vmem_budget_bytes:
                chosen = (cand_tq, cand_tk)
                break
        if chosen is not None:
            break
    tq, tk = chosen if chosen is not None else (tq_cands[-1], tk_cands[-1])
    nq, nk = Sq // tq, Sk // tk
    footprint = _flash_vmem_bytes(tq, tk, dk, dv, in_bytes, mask_bytes)

    inputs = [Q, K, V]
    in_specs = [
        pl.BlockSpec((None, tq, dk), lambda b, qi, ki: (b, qi, 0)),
        pl.BlockSpec((None, tk, dk), lambda b, qi, ki: (b, ki, 0)),
        pl.BlockSpec((None, tk, dv), lambda b, qi, ki: (b, ki, 0)),
    ]
    if has_mask:
        inputs.append(mask)
        in_specs.append(
            pl.BlockSpec((None, tq, tk), lambda b, qi, ki: (b, qi, ki)))

    kernel = functools.partial(_flash_fwd_kernel, scale=scale,
                               has_mask=has_mask, compute_dtype=compute_dtype)
    out, scores, lse = pl.pallas_call(
        kernel,
        out_shape=(jax.ShapeDtypeStruct((B, Sq, dv), Q.dtype),
                   jax.ShapeDtypeStruct((B, Sq, Sk), jnp.float32),
                   jax.ShapeDtypeStruct((B, Sq, 1), jnp.float32)),
        grid=(B, nq, nk),
        in_specs=in_specs,
        out_specs=(pl.BlockSpec((None, tq, dv), lambda b, qi, ki: (b, qi, 0)),
                   pl.BlockSpec((None, tq, tk), lambda b, qi, ki: (b, qi, ki)),
                   pl.BlockSpec((None, tq, 1), lambda b, qi, ki: (b, qi, 0))),
        scratch_shapes=[
            pltpu.VMEM((tq, dk), compute_dtype),   # scaled Q (hoisted)
            pltpu.VMEM((tq, 1), jnp.float32),      # running max
            pltpu.VMEM((tq, 1), jnp.float32),      # running denominator
            pltpu.VMEM((tq, dv), jnp.float32),     # output accumulator
        ],
        compiler_params=pltpu.CompilerParams(
            dimension_semantics=("parallel", "parallel", "arbitrary"),
            vmem_limit_bytes=_vmem_limit(footprint)),
        cost_estimate=pl.CostEstimate(flops=flops,
                                      transcendentals=transcendentals,
                                      bytes_accessed=io_bytes + B * Sq * Sk * 4),
    )(*inputs)

    # Cheap rescale pass: attn = exp(scores - lse).  For f32 inputs the scores
    # buffer is reused in place as the attention-weights output.
    alias = {0: 0} if jnp.dtype(Q.dtype) == jnp.float32 else {}
    attn = pl.pallas_call(
        _weights_from_scores_kernel,
        out_shape=jax.ShapeDtypeStruct((B, Sq, Sk), Q.dtype),
        grid=(B, nq, nk),
        in_specs=[pl.BlockSpec((None, tq, tk), lambda b, qi, ki: (b, qi, ki)),
                  pl.BlockSpec((None, tq, 1), lambda b, qi, ki: (b, qi, 0))],
        out_specs=pl.BlockSpec((None, tq, tk), lambda b, qi, ki: (b, qi, ki)),
        input_output_aliases=alias,
        compiler_params=pltpu.CompilerParams(
            dimension_semantics=("parallel", "parallel", "parallel"),
            vmem_limit_bytes=_vmem_limit(footprint)),
        cost_estimate=pl.CostEstimate(
            flops=B * Sq * Sk, transcendentals=B * Sq * Sk,
            bytes_accessed=B * Sq * Sk * (4 + in_bytes)),
    )(scores, lse)
    return out, attn


# --------------------------------------------------------------------------
# Reference + test
# --------------------------------------------------------------------------
def _reference(Q, K, V, mask, d_model):
    scores = jnp.einsum("bqd,bkd->bqk", Q, K) / math.sqrt(d_model)
    if mask is not None:
        scores = jnp.where(mask == 0, -jnp.inf, scores)
    attn = jax.nn.softmax(scores, axis=-1)
    return jnp.einsum("bqk,bkd->bqd", attn, V), attn


def _make_inputs(key, B, Sq, Sk, dk, dv):
    kq, kk, kv, km = jax.random.split(key, 4)
    Q = jax.random.normal(kq, (B, Sq, dk), dtype=jnp.float32)
    K = jax.random.normal(kk, (B, Sk, dk), dtype=jnp.float32)
    V = jax.random.normal(kv, (B, Sk, dv), dtype=jnp.float32)
    # At least one valid key per query row (the f32 reference would produce
    # NaN on fully-masked rows; the kernel intentionally stays finite there).
    mask = (jax.random.uniform(km, (B, Sq, Sk)) > 0.3).astype(jnp.float32)
    mask = mask.at[:, :, 0].set(1.0)
    return Q, K, V, mask


if __name__ == "__main__":
    key = jax.random.PRNGKey(0)

    # --- Fused (single-pass) path, masked and unmasked ---------------------
    B, Sq, Sk, d_k, d_v = 2, 8, 8, 32, 32
    Q, K, V, mask = _make_inputs(key, B, Sq, Sk, d_k, d_v)

    out, attn = scaled_dot_product_attention(Q, K, V, mask, d_model=d_k)
    jax.block_until_ready((out, attn))
    ref_out, ref_attn = _reference(Q, K, V, mask, d_k)
    assert jnp.allclose(out, ref_out, atol=1e-5, rtol=1e-5)
    assert jnp.allclose(attn, ref_attn, atol=1e-5, rtol=1e-5)

    out2, attn2 = scaled_dot_product_attention(Q, K, V, None, d_model=d_k)
    jax.block_until_ready((out2, attn2))
    ref_out2, ref_attn2 = _reference(Q, K, V, None, d_k)
    assert jnp.allclose(out2, ref_out2, atol=1e-5, rtol=1e-5)
    assert jnp.allclose(attn2, ref_attn2, atol=1e-5, rtol=1e-5)

    # --- Forced flash fallback (multi key-tile online softmax + rescale) ---
    B3, Sq3, Sk3, dk3, dv3 = 2, 256, 256, 32, 32
    Q3, K3, V3, mask3 = _make_inputs(jax.random.PRNGKey(1), B3, Sq3, Sk3, dk3, dv3)
    out3, attn3 = scaled_dot_product_attention(Q3, K3, V3, mask3, d_model=dk3,
                                               vmem_budget_bytes=1)
    jax.block_until_ready((out3, attn3))
    ref_out3, ref_attn3 = _reference(Q3, K3, V3, mask3, dk3)
    assert jnp.allclose(out3, ref_out3, atol=2e-5, rtol=1e-4)
    assert jnp.allclose(attn3, ref_attn3, atol=2e-5, rtol=1e-4)

    print("KERNEL_OK")
</pallas_src>

<mosaic_0001>
module attributes {stable_mosaic.version = 11 : i64} {
  func.func @_fused_attn_kernel(%arg0: i32, %arg1: i32, %arg2: memref<1x8x32xf32, #tpu.memory_space<vmem>>, %arg3: memref<1x8x32xf32, #tpu.memory_space<vmem>>, %arg4: memref<1x8x32xf32, #tpu.memory_space<vmem>>, %arg5: memref<1x8x8xf32, #tpu.memory_space<vmem>>, %arg6: memref<1x8x32xf32, #tpu.memory_space<vmem>>, %arg7: memref<1x8x8xf32, #tpu.memory_space<vmem>>) attributes {dimension_semantics = [#tpu.dimension_semantics<parallel>, #tpu.dimension_semantics<parallel>], iteration_bounds = array<i64: 2, 1>, scalar_prefetch = 0 : i64, scratch_operands = 0 : i64, tpu.core_type = #tpu.core_type<tc>, window_params = [{transform_indices = @transform_0, window_bounds = array<i64: 1, 8, 32>}, {transform_indices = @transform_1, window_bounds = array<i64: 1, 8, 32>}, {transform_indices = @transform_2, window_bounds = array<i64: 1, 8, 32>}, {transform_indices = @transform_3, window_bounds = array<i64: 1, 8, 8>}, {transform_indices = @transform_4, window_bounds = array<i64: 1, 8, 32>}, {transform_indices = @transform_5, window_bounds = array<i64: 1, 8, 8>}]} {
    %c0 = arith.constant 0 : index
    %c0_0 = arith.constant 0 : index
    %c0_1 = arith.constant 0 : index
    %0 = vector.load %arg2[%c0, %c0_0, %c0_1] : memref<1x8x32xf32, #tpu.memory_space<vmem>>, vector<1x8x32xf32>
    %1 = vector.shape_cast %0 : vector<1x8x32xf32> to vector<8x32xf32>
    %cst = arith.constant 0.176776692 : f32
    %2 = vector.broadcast %cst : f32 to vector<8x32xf32>
    %3 = arith.mulf %1, %2 : vector<8x32xf32>
    %c0_2 = arith.constant 0 : index
    %c0_3 = arith.constant 0 : index
    %c0_4 = arith.constant 0 : index
    %4 = vector.load %arg3[%c0_2, %c0_3, %c0_4] : memref<1x8x32xf32, #tpu.memory_space<vmem>>, vector<1x8x32xf32>
    %5 = vector.shape_cast %4 : vector<1x8x32xf32> to vector<8x32xf32>
    %cst_5 = arith.constant dense<0.000000e+00> : vector<8x8xf32>
    %6 = tpu.matmul %3, %5, %cst_5 {dimension_numbers = #tpu.dot_dimension_numbers<[1], [1], [0], [0], [0, 0, 1, 0], [], []>} : vector<8x32xf32>, vector<8x32xf32>, vector<8x8xf32> -> vector<8x8xf32>
    %c0_6 = arith.constant 0 : index
    %c0_7 = arith.constant 0 : index
    %c0_8 = arith.constant 0 : index
    %7 = vector.load %arg5[%c0_6, %c0_7, %c0_8] : memref<1x8x8xf32, #tpu.memory_space<vmem>>, vector<1x8x8xf32>
    %8 = vector.shape_cast %7 : vector<1x8x8xf32> to vector<8x8xf32>
    %cst_9 = arith.constant 0.000000e+00 : f32
    %9 = vector.broadcast %cst_9 : f32 to vector<8x8xf32>
    %10 = arith.cmpf one, %8, %9 : vector<8x8xf32>
    %cst_10 = arith.constant -1.000000e+30 : f32
    %11 = vector.broadcast %cst_10 : f32 to vector<8x8xf32>
    %12 = arith.select %10, %6, %11 : vector<8x8xi1>, vector<8x8xf32>
    %cst_11 = arith.constant dense<0xFF800000> : vector<8xf32>
    %13 = vector.multi_reduction <maximumf>, %12, %cst_11 [1] : vector<8x8xf32> to vector<8xf32>
    %14 = vector.shape_cast %13 : vector<8xf32> to vector<8x1xf32>
    %15 = vector.broadcast %14 : vector<8x1xf32> to vector<8x8xf32>
    %16 = arith.subf %12, %15 : vector<8x8xf32>
    %17 = math.exp %16 : vector<8x8xf32>
    %cst_12 = arith.constant dense<0.000000e+00> : vector<8xf32>
    %18 = vector.multi_reduction <add>, %17, %cst_12 [1] : vector<8x8xf32> to vector<8xf32>
    %19 = vector.shape_cast %18 : vector<8xf32> to vector<8x1xf32>
    %20 = tpu.reciprocal %19 {approx = true} : vector<8x1xf32> -> vector<8x1xf32>
    %21 = arith.mulf %19, %20 : vector<8x1xf32>
    %cst_13 = arith.constant 2.000000e+00 : f32
    %22 = vector.broadcast %cst_13 : f32 to vector<8x1xf32>
    %23 = arith.subf %22, %21 : vector<8x1xf32>
    %24 = arith.mulf %20, %23 : vector<8x1xf32>
    %25 = arith.mulf %19, %24 : vector<8x1xf32>
    %cst_14 = arith.constant 2.000000e+00 : f32
    %26 = vector.broadcast %cst_14 : f32 to vector<8x1xf32>
    %27 = arith.subf %26, %25 : vector<8x1xf32>
    %28 = arith.mulf %24, %27 : vector<8x1xf32>
    %29 = vector.broadcast %28 : vector<8x1xf32> to vector<8x8xf32>
    %30 = arith.mulf %17, %29 : vector<8x8xf32>
    %c0_15 = arith.constant 0 : index
    %c0_16 = arith.constant 0 : index
    %c0_17 = arith.constant 0 : index
    %31 = vector.load %arg7[%c0_15, %c0_16, %c0_17] : memref<1x8x8xf32, #tpu.memory_space<vmem>>, vector<1x8x8xf32>
    %32 = vector.shape_cast %31 : vector<1x8x8xf32> to vector<8x8xf32>
    %33 = vector.shape_cast %30 : vector<8x8xf32> to vector<1x8x8xf32>
    tpu.vector_store %arg7[%c0_15, %c0_16, %c0_17], %33 {strides = array<i32>} : memref<1x8x8xf32, #tpu.memory_space<vmem>>, vector<1x8x8xf32>,
    %c0_18 = arith.constant 0 : index
    %c0_19 = arith.constant 0 : index
    %c0_20 = arith.constant 0 : index
    %34 = vector.load %arg4[%c0_18, %c0_19, %c0_20] : memref<1x8x32xf32, #tpu.memory_space<vmem>>, vector<1x8x32xf32>
    %35 = vector.shape_cast %34 : vector<1x8x32xf32> to vector<8x32xf32>
    %cst_21 = arith.constant dense<0.000000e+00> : vector<8x32xf32>
    %36 = tpu.matmul %30, %35, %cst_21 {dimension_numbers = #tpu.dot_dimension_numbers<[1], [0], [0], [1], [0, 0, 1, 1], [], []>} : vector<8x8xf32>, vector<8x32xf32>, vector<8x32xf32> -> vector<8x32xf32>
    %c0_22 = arith.constant 0 : index
    %c0_23 = arith.constant 0 : index
    %c0_24 = arith.constant 0 : index
    %37 = vector.load %arg6[%c0_22, %c0_23, %c0_24] : memref<1x8x32xf32, #tpu.memory_space<vmem>>, vector<1x8x32xf32>
    %38 = vector.shape_cast %37 : vector<1x8x32xf32> to vector<8x32xf32>
    %39 = vector.shape_cast %36 : vector<8x32xf32> to vector<1x8x32xf32>
    tpu.vector_store %arg6[%c0_22, %c0_23, %c0_24], %39 {strides = array<i32>} : memref<1x8x32xf32, #tpu.memory_space<vmem>>, vector<1x8x32xf32>,
    return
  }
  func.func @transform_0(%arg0: i32, %arg1: i32) -> (i32, i32, i32) {
    %c0_i32 = arith.constant 0 : i32
    %c0_i32_0 = arith.constant 0 : i32
    return %arg0, %arg1, %c0_i32 : i32, i32, i32
  }
  func.func @transform_1(%arg0: i32, %arg1: i32) -> (i32, i32, i32) {
    %c0_i32 = arith.constant 0 : i32
    %c0_i32_0 = arith.constant 0 : i32
    %c0_i32_1 = arith.constant 0 : i32
    return %arg0, %c0_i32, %c0_i32_0 : i32, i32, i32
  }
  func.func @transform_2(%arg0: i32, %arg1: i32) -> (i32, i32, i32) {
    %c0_i32 = arith.constant 0 : i32
    %c0_i32_0 = arith.constant 0 : i32
    %c0_i32_1 = arith.constant 0 : i32
    return %arg0, %c0_i32, %c0_i32_0 : i32, i32, i32
  }
  func.func @transform_3(%arg0: i32, %arg1: i32) -> (i32, i32, i32) {
    %c0_i32 = arith.constant 0 : i32
    %c0_i32_0 = arith.constant 0 : i32
    return %arg0, %arg1, %c0_i32 : i32, i32, i32
  }
  func.func @transform_4(%arg0: i32, %arg1: i32) -> (i32, i32, i32) {
    %c0_i32 = arith.constant 0 : i32
    %c0_i32_0 = arith.constant 0 : i32
    return %arg0, %arg1, %c0_i32 : i32, i32, i32
  }
  func.func @transform_5(%arg0: i32, %arg1: i32) -> (i32, i32, i32) {
    %c0_i32 = arith.constant 0 : i32
    %c0_i32_0 = arith.constant 0 : i32
    return %arg0, %arg1, %c0_i32 : i32, i32, i32
  }
}

</mosaic_0001>

<bundles_post_ra>
// kernel: tpu_custom_call.1
= control target key start
LH: loop header
LB: loop body
LE: loop exit
PB: predicated region body
PF: predicated region fallthrough
CT: control target
= control target key end

     0   :  { %s1516_s0 = inlined_call_operand.hbm [shape: f32[2,8,32], index: 0, kind: input, shape index: {}]   ;;  %s1517_s1 = inlined_call_operand.hbm [shape: f32[2,8,32], index: 1, kind: input, shape index: {}]   ;;  %s1518_s2 = inlined_call_operand.hbm [shape: f32[2,8,32], index: 2, kind: input, shape index: {}]   ;;  %s1519_s3 = inlined_call_operand.hbm [shape: f32[2,8,8], index: 3, kind: input, shape index: {}]   ;;  %s1520_s4 = inlined_call_operand.hbm [shape: f32[2,8,32], index: 4, kind: output, shape index: {0}]   ;;  %s1521_s5 = inlined_call_operand.hbm [shape: f32[2,8,8], index: 5, kind: output, shape index: {1}]  }
   0x1   :  { %1532 = sst [smem:[#allocation24_spill]] %s1517_s1 }
   0x2   :  { %11 = vsyncpa [#allocation3], 0 }
   0x3   :  { %13 = vsyncpa [#allocation3 + $0x1], 0 }
   0x4   :  { %14 = vsyncpa [#allocation6], 0 }
   0x5   :  { %16 = vsyncpa [#allocation6 + $0x1], 0 }
   0x6   :  { %17 = vsyncpa [#allocation9], 0 }
   0x7   :  { %19 = vsyncpa [#allocation9 + $0x1], 0 }
   0x8   :  { %20 = vsyncpa [#allocation4], 0 }
   0x9   :  { %22 = vsyncpa [#allocation4 + $0x1], 0 }
   0xa   :  { %23 = vsyncpa [#allocation12], 0 }
   0xb   :  { %25 = vsyncpa [#allocation12 + $0x1], 0  ;;  %s1184_s18 = smov 0   ;;  %s1186_s19 = smov 0  }
   0xc   :  { %s1188_s20 = smov 0   ;;  %s1190_s21 = smov 0  }
   0xd   :  { %s1192_s22 = smov 0   ;;  %s1194_s23 = smov 0  }
   0xe LB: > { %1533 = sst [smem:[#allocation18_spill]] %s1132_s20  ;;  %s1215_s24 = sadd.s32 4294967295, %s1144_s23   ;;  %s1144_s23 = sphi %s1194_s23, %s31_s23   ;;  %s1140_s22 = sphi %s1192_s22, %s1561_s22   ;;  %s1136_s21 = sphi %s1190_s21, %s1560_s21   ;;  %s1132_s20 = sphi %s1188_s20, %s1559_s20   ;;  %s1128_s19 = sphi %s1186_s19, %s1563_s19   ;;  %s1124_s18 = sphi %s1184_s18, %s1562_s18  }
   0xf   : > { %1534 = sst [smem:[#allocation19_spill]] %s1140_s22  ;;  %s773_s25 = sadd.s32 4294967294, %s1144_s23  }
  0x10   : > { %1535 = sst [smem:[#allocation20_spill]] %s1144_s23  ;;  %s43_s26 = sadd.s32 1, %s1140_s22 }
  0x11   : > { %s52_s27 = sadd.s32 1, %s1132_s20  ;;  %p45_p0 = scmp.ge.s32.totalorder %s43_s26, 2 }
  0x12   : > { %p59_p1 = scmp.ne.s32.totalorder %s1132_s20, %s1128_s19  ;;  %p60_p2 = scmp.eq.s32.totalorder %s1144_s23, 0 }
  0x13   : > { %p65_p3 = scmp.ne.s32.totalorder %s1128_s19, %s1124_s18  ;;  %s1565_s26 = smov (%p45_p0, %s43_s26), 0 }
  0x14   : > { %1536 = sst [smem:[#allocation21_spill]] %s1565_s26  ;;  %p1227_p4 = por %p60_p2, %p59_p1 }
  0x15   : > { %p66_p5 = scmp.eq.s32.totalorder %s1215_s24, 0  ;;  %s47_s29 = ssub.s32 %s1140_s22, %s1565_s26 }
  0x16   : > { %p171_p6 = scmp.eq.s32.totalorder %s1215_s24, 1  ;;  %p50_p7 = scmp.eq.s32.totalorder %s47_s29, 0 }
  0x17   : > { %p1235_p8 = por %p66_p5, %p65_p3  ;;  %p177_p10 = scmp.eq.s32.totalorder %s773_s25, 1 }
  0x18   : > { %p1239_p9 = por %p171_p6, %p59_p1  ;;  %p846_p13 = scmp.lt.s32.totalorder %s1144_s23, 2 }
  0x19   : > { %s1538_s30 = scalar_select %p1235_p8, 1, 0 }
  0x1a   : > { %s1539_s6 = scalar_select %p1239_p9, 1, 0 }
  0x1b   : > { %s1244_s7 = scalar_select %p50_p7, %s1132_s20, %s52_s27  }
  0x1c   : > { %p1246_p11 = por %p177_p10, %p65_p3  ;;  %s1253_s9 = sand.u32 1, %s1132_s20  }
  0x1d   : > { %1540 = sst [smem:[#allocation22_spill]] %s1244_s7  ;;  %s1256_s10 = sshll.u32 %s1253_s9, 3 }
  0x1e   : > { %s1541_s8 = scalar_select %p1246_p11, 1, 0 }
  0x1f   : > { %s1259_s11 = sshll.u32 %s1140_s22, 7  ;;  %p1263_p0 = pnand %p846_p13, %p1227_p4 }
  0x20   : > { %1542 = sst [smem:[#allocation23_spill]] %s1541_s8  ;;  %s244_s13 = sand.u32 1, %s1144_s23  }
  0x21   : > { %s1543_s12 = scalar_select %p1263_p0, 1, 0 }
  0x22   : > { %s1544_s1 = sld [smem:[#allocation24_spill]]  ;;  %s248_s17 = scalar_lea.vmem [#allocation5], %s1256_s10 }
  0x23   : > { %s255_s25 = sshll.u32 %s248_s17, 4  ;;  %s1279_s27 = scalar_lea.sflag [#allocation6], %s244_s13  ;;  %s1276_s25 = int_to_ptr.vmem [resolvable:$true] %s255_s25 }
  0x24   : > { %p1285_p4 = pneg %p1263_p0 }
  0x28   : > { %s1272_s16 = scalar_lea.hbm %s1544_s1, %s1259_s11  ;;  %s907_s17 = scalar_lea.hbm %s1544_s1, 256 }
  0x29   : > { %s902_s28 = scalar_lea.hbm %s1272_s16, 128  ;;  %p908_p7 = scmp.lt.u32.totalorder %s1272_s16, %s1544_s1 }
  0x2a   : > { %p903_p3 = scmp.ne.s32.totalorder %s1272_s16, %s902_s28  ;;  %p909_p10 = scmp.lt.u32.totalorder %s907_s17, %s902_s28 }
  0x2b   : > { %p911_p12 = scmp.lt.u32.totalorder %s902_s28, %s1272_s16 }
  0x2c   : > { %p905_p5 = pnand %p1285_p4, %p903_p3  ;;  %p910_p13 = por %p909_p10, %p908_p7 }
  0x2e   : > { %p906_p6 = pneg %p905_p5  ;;  %p912_p1 = por %p911_p12, %p910_p13 }
  0x30   : > { %p913_p2 = pnand %p912_p1, %p906_p6 }
  0x32   : > { %916 = shalt.err (!%p913_p2)
}
  0x33   : > { %s917_s13 = scalar_lea.vmem %s1276_s25, 128  ;;  %s1146_s14 = smov [#allocation5]  }
  0x34   : > { %p918_p3 = scmp.ne.s32.totalorder %s1276_s25, %s917_s13  ;;  %s922_s15 = sshll.u32 %s1146_s14, 4  ;;  %s923_s15 = int_to_ptr.vmem [resolvable:$false] %s922_s15 }
  0x35   : > { %s924_s22 = scalar_lea.vmem %s923_s15, 256  ;;  %p925_p9 = scmp.lt.s32.totalorder %s1276_s25, %s923_s15 }
  0x36   : > { %p920_p5 = pnand %p918_p3, %p1285_p4  ;;  %p926_p8 = scmp.lt.s32.totalorder %s924_s22, %s917_s13 }
  0x38   : > { %p921_p11 = pneg %p920_p5  ;;  %p927_p7 = por %p926_p8, %p925_p9 }
  0x3a   : > { %p928_p10 = pnand %p927_p7, %p921_p11 }
  0x3c   : > { %931 = shalt.err (!%p928_p10)
}
  0x3d   : > { %832 = dma.hbm_to_vmem [thread:$0]  (!%p1263_p0), %s1272_s16, 128, %s1276_s25, %s1279_s27  }
  0x3e   : > { %p1546_p12 = scmp.lt.s32.totalorder %s1144_s23, 3  ;;  %p1547_p1 = scmp.ge.s32.totalorder %s1144_s23, 1 }
  0x3f   : > { %s1321_s13 = scalar_lea.hbm %s1516_s0, %s1259_s11  ;;  %s229_s14 = scalar_lea.vmem [#allocation2], %s1256_s10 }
  0x40   : > { %p1313_p2 = pnand %p1547_p1, %p1546_p12  ;;  %s237_s15 = sshll.u32 %s229_s14, 4  ;;  %s1324_s15 = int_to_ptr.vmem [resolvable:$true] %s237_s15 }
  0x41   : > { %s1330_s22 = scalar_lea.hbm %s1518_s2, %s1259_s11  ;;  %s226_s1 = scalar_lea.sflag [#allocation3], %s1253_s9 }
  0x42   : > { %s1548_s26 = scalar_select %p1313_p2, 1, 0 }
  0x43   : > { %s932_s7 = scalar_lea.hbm %s1321_s13, 128  ;;  %s937_s20 = scalar_lea.hbm %s1516_s0, 256 }
  0x44   : > { %p933_p8 = scmp.ne.s32.totalorder %s1321_s13, %s932_s7  ;;  %p938_p6 = scmp.lt.u32.totalorder %s1321_s13, %s1516_s0 }
  0x45   : > { %p939_p13 = scmp.lt.u32.totalorder %s937_s20, %s932_s7  ;;  %p941_p5 = scmp.lt.u32.totalorder %s932_s7, %s1321_s13 }
  0x46   : > { %p935_p9 = pnand %p933_p8, %p1285_p4 }
  0x47   : > { %p940_p3 = por %p939_p13, %p938_p6 }
  0x48   : > { %p936_p11 = pneg %p935_p9 }
  0x49   : > { %p942_p7 = por %p941_p5, %p940_p3 }
  0x4b   : > { %p943_p10 = pnand %p942_p7, %p936_p11 }
  0x4d   : > { %946 = shalt.err (!%p943_p10)
}
  0x4e   : > { %s947_s14 = scalar_lea.vmem %s1324_s15, 128  ;;  %s1147_s16 = smov [#allocation2]  }
  0x4f   : > { %p948_p12 = scmp.ne.s32.totalorder %s1324_s15, %s947_s14  ;;  %s952_s25 = sshll.u32 %s1147_s16, 4  ;;  %s953_s25 = int_to_ptr.vmem [resolvable:$false] %s952_s25 }
  0x50   : > { %s954_s23 = scalar_lea.vmem %s953_s25, 256  ;;  %p955_p9 = scmp.lt.s32.totalorder %s1324_s15, %s953_s25 }
  0x51   : > { %p950_p1 = pnand %p948_p12, %p1285_p4  ;;  %p956_p2 = scmp.lt.s32.totalorder %s954_s23, %s947_s14 }
  0x53   : > { %p951_p8 = pneg %p950_p1  ;;  %p957_p6 = por %p956_p2, %p955_p9 }
  0x55   : > { %p958_p13 = pnand %p957_p6, %p951_p8 }
  0x57   : > { %961 = shalt.err (!%p958_p13)
}
  0x58   : > { %829 = dma.hbm_to_vmem [thread:$0]  (!%p1263_p0), %s1321_s13, 128, %s1324_s15, %s226_s1  }
  0x59   : > { %s266_s20 = scalar_lea.vmem [#allocation7], %s1256_s10  ;;  %s962_s8 = scalar_lea.hbm %s1330_s22, 128 }
  0x5a   : > { %s273_s7 = sshll.u32 %s266_s20, 4  ;;  %p963_p11 = scmp.ne.s32.totalorder %s1330_s22, %s962_s8  ;;  %s274_s7 = int_to_ptr.vmem [resolvable:$true] %s273_s7 }
  0x5b   : > { %s967_s14 = scalar_lea.hbm %s1518_s2, 256  ;;  %p968_p5 = scmp.lt.u32.totalorder %s1330_s22, %s1518_s2 }
  0x5c   : > { %p965_p2 = pnand %p963_p11, %p1285_p4  ;;  %p969_p7 = scmp.lt.u32.totalorder %s967_s14, %s962_s8 }
  0x5d   : > { %p971_p12 = scmp.lt.u32.totalorder %s962_s8, %s1330_s22 }
  0x5e   : > { %p966_p3 = pneg %p965_p2  ;;  %p970_p10 = por %p969_p7, %p968_p5 }
  0x60   : > { %p972_p1 = por %p971_p12, %p970_p10 }
  0x62   : > { %p973_p8 = pnand %p972_p1, %p966_p3 }
  0x64   : > { %976 = shalt.err (!%p973_p8)
}
  0x65   : > { %s977_s1 = scalar_lea.vmem %s274_s7, 128  ;;  %s1148_s13 = smov [#allocation7]  }
  0x66   : > { %p978_p9 = scmp.ne.s32.totalorder %s274_s7, %s977_s1  ;;  %s982_s15 = sshll.u32 %s1148_s13, 4  ;;  %s983_s15 = int_to_ptr.vmem [resolvable:$false] %s982_s15 }
  0x67   : > { %s984_s23 = scalar_lea.vmem %s983_s15, 256  ;;  %p985_p11 = scmp.lt.s32.totalorder %s274_s7, %s983_s15 }
  0x68   : > { %p980_p6 = pnand %p978_p9, %p1285_p4  ;;  %p986_p2 = scmp.lt.s32.totalorder %s984_s23, %s977_s1 }
  0x6a   : > { %p981_p13 = pneg %p980_p6  ;;  %p987_p0 = por %p986_p2, %p985_p11 }
  0x6c   : > { %p988_p5 = pnand %p987_p0, %p981_p13 }
  0x6e   : > { %991 = shalt.err (!%p988_p5)
}
  0x6f   : > { %p1549_p7 = scmp.ne.s32.totalorder %s1543_s12, 0  ;;  %s1377_s28 = scalar_lea.hbm %s1519_s3, %s1259_s11 }
  0x70   : > { %s284_s17 = scalar_lea.vmem [#allocation8], %s1256_s10  ;;  %s281_s16 = scalar_lea.sflag [#allocation9], %s1253_s9 }
  0x71   : > { %835 = dma.hbm_to_vmem [thread:$0]  (!%p1549_p7), %s1330_s22, 128, %s274_s7, %s1279_s27  }
  0x72   : > { %s292_s14 = sshll.u32 %s284_s17, 4  ;;  %s992_s25 = scalar_lea.hbm %s1377_s28, 128  ;;  %s293_s14 = int_to_ptr.vmem [resolvable:$true] %s292_s14 }
  0x73   : > { %p993_p0 = scmp.ne.s32.totalorder %s1377_s28, %s992_s25  ;;  %s997_s22 = scalar_lea.hbm %s1519_s3, 256 }
  0x74   : > { %p998_p12 = scmp.lt.u32.totalorder %s1377_s28, %s1519_s3  ;;  %p999_p1 = scmp.lt.u32.totalorder %s997_s22, %s992_s25 }
  0x75   : > { %p995_p3 = pnand %p993_p0, %p1285_p4  ;;  %p1001_p9 = scmp.lt.u32.totalorder %s992_s25, %s1377_s28 }
  0x76   : > { %p1000_p8 = por %p999_p1, %p998_p12 }
  0x77   : > { %p996_p10 = pneg %p995_p3 }
  0x78   : > { %p1002_p6 = por %p1001_p9, %p1000_p8 }
  0x7a   : > { %p1003_p13 = pnand %p1002_p6, %p996_p10 }
  0x7c   : > { %1006 = shalt.err (!%p1003_p13)
}
  0x7d   : > { %s1007_s9 = scalar_lea.vmem %s293_s14, 128  ;;  %s1149_s10 = smov [#allocation8]  }
  0x7e   : > { %p1008_p11 = scmp.ne.s32.totalorder %s293_s14, %s1007_s9  ;;  %s1012_s13 = sshll.u32 %s1149_s10, 4  ;;  %s1013_s13 = int_to_ptr.vmem [resolvable:$false] %s1012_s13 }
  0x7f   : > { %s1014_s15 = scalar_lea.vmem %s1013_s13, 256  ;;  %p1015_p0 = scmp.lt.s32.totalorder %s293_s14, %s1013_s13 }
  0x80   : > { %p1010_p2 = pnand %p1008_p11, %p1285_p4  ;;  %p1016_p3 = scmp.lt.s32.totalorder %s1014_s15, %s1007_s9 }
  0x82   : > { %p1011_p5 = pneg %p1010_p2  ;;  %p1017_p7 = por %p1016_p3, %p1015_p0 }
  0x84   : > { %p1018_p1 = pnand %p1017_p7, %p1011_p5 }
  0x86   : > { %1021 = shalt.err (!%p1018_p1)
}
  0x87   : > { %p1550_p12 = scmp.ne.s32.totalorder %s1543_s12, 0  ;;  %p1551_p10 = scmp.ne.s32.totalorder %s1548_s26, 0 }
  0x88   : > { %s1401_s29 = sand.u32 (!%p1551_p10), 1, %s1128_s19   ;;  %p1552_p4 = scmp.ne.s32.totalorder (!%p1551_p10), %s1538_s30, 0 }
  0x89   : > { %838 = dma.hbm_to_vmem [thread:$0]  (!%p1550_p12), %s1377_s28, 128, %s293_s14, %s281_s16  }
  0x8a   : > { %301 = sbr.rel (%p1551_p10) target bundleno = 923 (0x39b), region = 36  ;;  %s1404_s23 = sshll.u32 (!%p1551_p10), %s1401_s29, 3 }
  0x8b   : > { %s304_s20 = scalar_lea.sflag (!%p1551_p10), [#allocation3], %s1401_s29  ;;  %s307_s8 = scalar_lea.vmem (!%p1551_p10), [#allocation2], %s1404_s23 }
  0x91   : > { %1103 = dma.done.wait (%p1552_p4), %s304_s20, 128  }
  0x92   : > { %1105 = vsyncadd (%p1552_p4), %s304_s20, 4294967168  ;;  %s312_s12 = sand.u32 1, %s1215_s24   ;;  %s316_s28 = scalar_lea.vmem [#allocation5], %s1404_s23 }
  0x93   : > { %s313_s26 = scalar_lea.sflag [#allocation6], %s312_s12 }
  0x94   : > { %1107 = dma.done.wait (%p1552_p4), %s313_s26, 256  }
  0x95   : > { %1109 = vsyncadd (%p1552_p4), %s313_s26, 4294967040  ;;  %s325_s17 = scalar_lea.vmem [#allocation7], %s1404_s23  ;;  %s331_s14 = scalar_lea.sflag [#allocation9], %s1401_s29 }
  0x96   : > { %s334_s16 = scalar_lea.vmem [#allocation8], %s1404_s23 }
  0x97   : > { %1111 = dma.done.wait (%p1552_p4), %s331_s14, 128  }
  0x98   : > { %1113 = vsyncadd (%p1552_p4), %s331_s14, 4294967168  ;;  %v1150_v0 = vmov 0.0   ;;  %vm1151_vm0 = vmmov 0   ;;  %vm384_vm1 = vcmask 261120   ;;  %v383_v1 = vld [vmem:[%s316_s28] sm:$0xff]  ;;  %v381_v2 = vld [vmem:[%s307_s8] sm:$0xff] }
  0x99   : > { %804 = vmatprep.subr.mxu0 %v1150_v0  ;;  %806 = vmatprep.mubr.msk.f32.mxu0 %vm1151_vm0, %v1150_v0  ;;  %v382_v3 = vmul.f32 0.17677669, %v381_v2  ;;  %v461_v4 = vld [vmem:[%s334_s16] sm:$0xff]  ;;  %vm464_vm3 = vcmask 64512   ;;  %v483_v14 = vld [vmem:[%s325_s17] sm:$0xff]  ;;  %s380_s24 = scalar_lea.vmem [#allocation11], %s1404_s23 }
  0x9a   : > { %809 = vmatprep.subr.mxu1 %v1150_v0  ;;  %811 = vmatprep.mubr.msk.f32.mxu1 %vm1151_vm0, %v1150_v0  ;;  %vm462_vm2 = vcmp.ne.f32.partialorder %v461_v4, 0.0  ;;  %s796_s30 = sshll.u32 %s1136_s21, 7  ;;  %s592_s22 = sshll.u32 %s380_s24, 4  ;;  %s593_s22 = int_to_ptr.vmem [resolvable:$true] %s592_s22 }
  0x9b   : > { %805 = vmatpush3.xpose.msk.msra.mxu0 %vm384_vm1, %v383_v1  ;;  %810 = vmatpush3.msra.mxu1 %v483_v14  ;;  %s1440_s27 = scalar_lea.hbm %s1521_s5, %s796_s30  ;;  %s564_s7 = scalar_lea.sflag [#allocation12], %s1401_s29 }
  0x9c   : > { %s1022_s11 = scalar_lea.vmem %s593_s22, 128  ;;  %p1553_p8 = scmp.ne.s32.totalorder %s1539_s6, 0 }
  0x9d   : > { %p1023_p7 = scmp.ne.s32.totalorder %s593_s22, %s1022_s11  ;;  %s1152_s9 = smov [#allocation11]  }
  0x9e   : > { %807 = vmatmul.mubr.msk.f32.vlgmr.msra.gmra.mrb[0].mxu0 %vm384_vm1, %v382_v3  ;;  %s1026_s10 = sshll.u32 %s1152_s9, 4  ;;  %s1027_s10 = int_to_ptr.vmem [resolvable:$false] %s1026_s10 }
  0x9f   : > { %p1024_p9 = pnand %p1023_p7, %p1553_p8  ;;  %s1028_s13 = scalar_lea.vmem %s1027_s10, 256 }
  0xa0   : > { %p1029_p13 = scmp.lt.s32.totalorder %s593_s22, %s1027_s10  ;;  %p1030_p11 = scmp.lt.s32.totalorder %s1028_s13, %s1022_s11 }
  0xa1   : > { %p1025_p6 = pneg %p1024_p9 }
  0xa2   : > { %p1031_p2 = por %p1030_p11, %p1029_p13 }
  0xa4   : > { %p1032_p5 = pnand %p1031_p2, %p1025_p6 }
 0x171   : > { %v457_v5 = vpop.f32.mrb[0].mxu0 }
 0x172   : > { %v463_v6 = vsel %vm462_vm2, %v457_v5, -1e+30  ;;  %v808_v7 = vpop.f32.mrb[1].mxu0 }
 0x173   : > { %v465_v8 = vsel %vm464_vm3, %v463_v6, -inf }
 0x174   : > { %466 = vmax.xlane.f32.xlu0 %v465_v8 }
 0x201   : > { %v467_v9 = vpop.xlane.xlu0 %466 }
 0x202   : > { %v468_v10 = vsub.f32 %v463_v6, %v467_v9 }
 0x204   : > { %v469_v11 = vmul.f32 1.442695, %v468_v10 }
 0x206   : > { %898 = vpow2.f32 %v469_v11 }
 0x210   : > { %v899_v12 = vpop.eup %898 }
 0x211   : > { %v471_v13 = vsel %vm464_vm3, %v899_v12, 0.0 }
 0x212   : > { %472 = vadd.xlane.f32.xlu0 %v471_v13 }
 0x29f   : > { %v473_v15 = vpop.xlane.xlu0 %472 }
 0x2a0   : > { %900 = vrcp.f32 %v473_v15 }
 0x2aa   : > { %v901_v16 = vpop.eup %900 }
 0x2ab   : > { %v475_v17 = vmul.f32 %v901_v16, %v473_v15 }
 0x2ad   : > { %v476_v18 = vsub.f32 2.0, %v475_v17 }
 0x2af   : > { %v477_v19 = vmul.f32 %v901_v16, %v476_v18 }
 0x2b1   : > { %v478_v20 = vmul.f32 %v477_v19, %v473_v15 }
 0x2b3   : > { %v479_v21 = vsub.f32 2.0, %v478_v20 }
 0x2b5   : > { %v480_v22 = vmul.f32 %v479_v21, %v477_v19 }
 0x2b7   : > { %v481_v23 = vmul.f32 %v899_v12, %v480_v22 }
 0x2b9   : > { %812 = vmatmul.mubr.msk.f32.vlgmr.msra.gmra.mrb[0].mxu1 %vm464_vm3, %v481_v23  ;;  %482 = vst.msk [vmem:[%s380_s24] sm:$0xff] %vm464_vm3, %v481_v23 }
 0x2ba   : > { %1035 = shalt.err (!%p1032_p5)
}
 0x2bb   : > { %s1036_s15 = scalar_lea.hbm %s1440_s27, 128  ;;  %s1040_s12 = scalar_lea.hbm %s1521_s5, 256 }
 0x2bc   : > { %p1037_p0 = scmp.ne.s32.totalorder %s1440_s27, %s1036_s15  ;;  %p1041_p12 = scmp.lt.u32.totalorder %s1440_s27, %s1521_s5 }
 0x2bd   : > { %p1042_p10 = scmp.lt.u32.totalorder %s1040_s12, %s1036_s15  ;;  %p1044_p7 = scmp.lt.u32.totalorder %s1036_s15, %s1440_s27 }
 0x2be   : > { %p1038_p3 = pnand %p1037_p0, %p1553_p8 }
 0x2bf   : > { %p1043_p4 = por %p1042_p10, %p1041_p12 }
 0x2c0   : > { %p1039_p1 = pneg %p1038_p3 }
 0x2c1   : > { %p1045_p9 = por %p1044_p7, %p1043_p4 }
 0x2c3   : > { %p1046_p6 = pnand %p1045_p9, %p1039_p1 }
 0x2c5   : > { %1049 = shalt.err (!%p1046_p6)
}
 0x2c6   : > { %823 = dma.vmem_to_hbm [thread:$0]  (%p1553_p8), %s593_s22, 128, %s1440_s27, %s564_s7  }
 0x2c7   : > { %s373_s17 = scalar_lea.vmem [#allocation10], %s1404_s23  ;;  %s1466_s25 = scalar_lea.hbm %s1520_s4, %s796_s30 }
 0x2c8   : > { %s578_s14 = sshll.u32 %s373_s17, 4  ;;  %s559_s1 = scalar_lea.sflag [#allocation4], %s1401_s29  ;;  %s1468_s14 = int_to_ptr.vmem [resolvable:$true] %s578_s14 }
 0x2c9   : > { %s1050_s11 = scalar_lea.vmem %s1468_s14, 128  ;;  %s1153_s21 = smov [#allocation10]  }
 0x2ca   : > { %p1051_p13 = scmp.ne.s32.totalorder %s1468_s14, %s1050_s11  ;;  %s1054_s23 = sshll.u32 %s1153_s21, 4  ;;  %s1055_s23 = int_to_ptr.vmem [resolvable:$false] %s1054_s23 }
 0x2cb   : > { %s1056_s30 = scalar_lea.vmem %s1055_s23, 256  ;;  %p1057_p5 = scmp.lt.s32.totalorder %s1468_s14, %s1055_s23 }
 0x2cc   : > { %p1052_p11 = pnand %p1051_p13, %p1553_p8  ;;  %p1058_p0 = scmp.lt.s32.totalorder %s1056_s30, %s1050_s11 }
 0x2ce   : > { %p1053_p2 = pneg %p1052_p11  ;;  %p1059_p3 = por %p1058_p0, %p1057_p5 }
 0x2d0   : > { %p1060_p1 = pnand %p1059_p3, %p1053_p2 }
 0x38c   : > { %v553_v24 = vpop.f32.mrb[0].mxu1 }
 0x38d   : > { %557 = vst.msk [vmem:[%s373_s17] sm:$0xff] %vm384_vm1, %v553_v24  ;;  %v813_v25 = vpop.f32.mrb[1].mxu1 }
 0x38e   : > { %1063 = shalt.err (!%p1060_p1)
}
 0x38f   : > { %s1064_s29 = scalar_lea.hbm %s1466_s25, 128  ;;  %s1068_s7 = scalar_lea.hbm %s1520_s4, 256 }
 0x390   : > { %p1065_p12 = scmp.ne.s32.totalorder %s1466_s25, %s1064_s29  ;;  %p1069_p7 = scmp.lt.u32.totalorder %s1466_s25, %s1520_s4 }
 0x391   : > { %p1070_p9 = scmp.lt.u32.totalorder %s1068_s7, %s1064_s29  ;;  %p1072_p13 = scmp.lt.u32.totalorder %s1064_s29, %s1466_s25 }
 0x392   : > { %p1066_p10 = pnand %p1065_p12, %p1553_p8 }
 0x393   : > { %p1071_p6 = por %p1070_p9, %p1069_p7 }
 0x394   : > { %p1067_p4 = pneg %p1066_p10 }
 0x395   : > { %p1073_p11 = por %p1072_p13, %p1071_p6 }
 0x397   : > { %p1074_p2 = pnand %p1073_p11, %p1067_p4 }
 0x399   : > { %1077 = shalt.err (!%p1074_p2)
}
 0x39a   : > { %822 = dma.vmem_to_hbm [thread:$0]  (%p1553_p8), %s1468_s14, 128, %s1466_s25, %s559_s1  }
 0x39b PF: > { %s1554_s13 = sld [smem:[#allocation23_spill]]  ;;  %s1555_s15 = sld [smem:[#allocation20_spill]] }
 0x39c   : > { %s604_s20 = sand.u32 1, %s1124_s18  }
 0x39d   : > { %s605_s8 = scalar_lea.sflag [#allocation4], %s604_s20 }
 0x3a1   : > { %p1556_p5 = scmp.ne.s32.totalorder %s1554_s13, 0  ;;  %p1557_p0 = scmp.ge.s32.totalorder %s1555_s15, 2 }
 0x3a3   : > { %p840_p3 = pnand %p1557_p0, %p1556_p5 }
 0x3a5   : > { %1115 = dma.done.wait (!%p840_p3), %s605_s8, 128  }
 0x3a6   : > { %1117 = vsyncadd (!%p840_p3), %s605_s8, 4294967168  ;;  %s614_s12 = scalar_lea.sflag [#allocation12], %s604_s20 }
 0x3a7   : > { %1119 = dma.done.wait (!%p840_p3), %s614_s12, 128  }
 0x3a8   : > { %1121 = vsyncadd (!%p840_p3), %s614_s12, 4294967168  ;;  %s31_s23 = sadd.s32 1, %s1555_s15   ;;  %s1558_s6 = sld [smem:[#allocation18_spill]] }
 0x3a9   : > { %p28_p1 = scmp.ge.s32.totalorder %s31_s23, 4   ;;  %s1559_s20 = sld [smem:[#allocation22_spill]] }
 0x3aa   : > { %s1560_s21 = sld [smem:[#allocation19_spill]]  ;;  %s1561_s22 = sld [smem:[#allocation21_spill]] }
 0x3ab   : > { %s1562_s18 = smov %s1128_s19  ;;  %30 = sbr.rel (!%p28_p1) target bundleno = 14 (0xe), region = 135 }
 0x3ae   : > { %s1563_s19 = smov %s1558_s6 }
 0x3b2   :  { %619 = vsyncpa [#allocation3], 1 }
 0x3b3   :  { %621 = vsyncpa [#allocation3 + $0x1], 1 }
 0x3b4   :  { %622 = vsyncpa [#allocation6], 1 }
 0x3b5   :  { %624 = vsyncpa [#allocation6 + $0x1], 1 }
 0x3b6   :  { %625 = vsyncpa [#allocation9], 1 }
 0x3b7   :  { %627 = vsyncpa [#allocation9 + $0x1], 1 }
 0x3b8   :  { %628 = vsyncpa [#allocation4], 1 }
 0x3b9   :  { %630 = vsyncpa [#allocation4 + $0x1], 1 }
 0x3ba   :  { %631 = vsyncpa [#allocation12], 1 }
 0x3bb   :  { %633 = vsyncpa [#allocation12 + $0x1], 1 }

</bundles_post_ra>
